<compile_context>
chip_gen: v5e
topology: v5e:2x2
jax: 0.10.0
libtpu: 0.0.40
codegen_flags: <defaults>
</compile_context>

<pallas_src>
import jax
import jax.numpy as jnp
from jax.experimental import pallas as pl
from jax.experimental.pallas import tpu as pltpu


def _tv_kernel(x_ref, part_h_ref, part_w_ref):
    # x_ref: (bn, H, W) block in native dtype; cast to f32 in-register.
    xf = x_ref[...].astype(jnp.float32)
    _, H, W = xf.shape

    # Height (sublane) differences; reduce immediately so diff_h and diff_w
    # are never both live in VMEM.
    if H > 1:
        sum_h = jnp.sum(jnp.abs(xf[:, 1:, :] - xf[:, :-1, :]))
    else:
        sum_h = jnp.float32(0.0)
    part_h_ref[...] = jnp.full(part_h_ref.shape, sum_h, dtype=jnp.float32)

    # Width (lane) differences.
    if W > 1:
        sum_w = jnp.sum(jnp.abs(xf[:, :, 1:] - xf[:, :, :-1]))
    else:
        sum_w = jnp.float32(0.0)
    part_w_ref[...] = jnp.full(part_w_ref.shape, sum_w, dtype=jnp.float32)


def total_variation_loss(x, *, vmem_budget_bytes=12 * 1024 * 1024):
    """x: (N, C, H, W). Returns scalar TV loss = mean(|dh|) + mean(|dw|)."""
    N, C, H, W = x.shape
    NC = N * C

    # Keep native dtype for the HBM->VMEM DMA; kernel casts to f32.
    y = x.reshape(NC, H, W)
    itemsize = y.dtype.itemsize

    # Size the per-block image count from the *padded* VMEM footprint:
    #   input block (native dtype, double-buffered x2) + f32 upcast copy
    #   + one transient f32 diff tensor, all laid out with H->8, W->128 pad.
    Hp = -(-H // 8) * 8
    Wp = -(-W // 128) * 128
    vmem_per_img = Hp * Wp * (2 * itemsize + 4 + 4)
    bn = max(1, min(NC, vmem_budget_bytes // max(vmem_per_img, 1)))
    num_blocks = -(-NC // bn)  # cdiv
    nc_pad = num_blocks * bn
    if nc_pad != NC:
        # Zero images contribute exactly 0 to both diff sums, so padding the
        # batch axis is safe; we divide by the true element counts below.
        y = jnp.pad(y, ((0, nc_pad - NC), (0, 0), (0, 0)))

    flops = 4 * NC * H * W  # two sub+abs+add passes over the data
    bytes_accessed = nc_pad * H * W * itemsize + 2 * num_blocks * 8 * 128 * 4

    part_h, part_w = pl.pallas_call(
        _tv_kernel,
        grid=(num_blocks,),
        in_specs=[pl.BlockSpec((bn, H, W), lambda i: (i, 0, 0))],
        out_specs=(
            pl.BlockSpec((1, 8, 128), lambda i: (i, 0, 0)),
            pl.BlockSpec((1, 8, 128), lambda i: (i, 0, 0)),
        ),
        out_shape=(
            jax.ShapeDtypeStruct((num_blocks, 8, 128), jnp.float32),
            jax.ShapeDtypeStruct((num_blocks, 8, 128), jnp.float32),
        ),
        compiler_params=pltpu.CompilerParams(
            dimension_semantics=("parallel",),
            vmem_limit_bytes=32 * 1024 * 1024,
        ),
        cost_estimate=pl.CostEstimate(
            flops=flops, transcendentals=0, bytes_accessed=bytes_accessed
        ),
    )(y)

    sum_h = jnp.sum(part_h[:, 0, 0])
    sum_w = jnp.sum(part_w[:, 0, 0])
    n_h = NC * (H - 1) * W  # number of elements in diff_h
    n_w = NC * H * (W - 1)  # number of elements in diff_w
    # H==1 or W==1 gives 0/0 -> NaN, matching torch.mean of an empty tensor.
    return sum_h / n_h + sum_w / n_w


def _reference(x):
    diff_h = jnp.abs(x[:, :, 1:, :] - x[:, :, :-1, :])
    diff_w = jnp.abs(x[:, :, :, 1:] - x[:, :, :, :-1])
    return diff_h.mean() + diff_w.mean()


if __name__ == "__main__":
    key = jax.random.PRNGKey(0)
    x = jax.random.normal(key, (2, 4, 16, 16), dtype=jnp.float32)

    out = jax.block_until_ready(total_variation_loss(x))

    ref = _reference(x)
    assert jnp.allclose(out, ref, rtol=1e-5, atol=1e-6), (out, ref)
    print("KERNEL_OK")
</pallas_src>

<mosaic_0001>
module attributes {stable_mosaic.version = 11 : i64} {
  func.func @_tv_kernel(%arg0: i32, %arg1: memref<8x16x16xf32, #tpu.memory_space<vmem>>, %arg2: memref<1x8x128xf32, #tpu.memory_space<vmem>>, %arg3: memref<1x8x128xf32, #tpu.memory_space<vmem>>) attributes {dimension_semantics = [#tpu.dimension_semantics<parallel>], iteration_bounds = array<i64: 1>, scalar_prefetch = 0 : i64, scratch_operands = 0 : i64, tpu.core_type = #tpu.core_type<tc>, window_params = [{transform_indices = @transform_0, window_bounds = array<i64: 8, 16, 16>}, {transform_indices = @transform_1, window_bounds = array<i64: 1, 8, 128>}, {transform_indices = @transform_2, window_bounds = array<i64: 1, 8, 128>}]} {
    %c0 = arith.constant 0 : index
    %c0_0 = arith.constant 0 : index
    %c0_1 = arith.constant 0 : index
    %0 = vector.load %arg1[%c0, %c0_0, %c0_1] : memref<8x16x16xf32, #tpu.memory_space<vmem>>, vector<8x16x16xf32>
    %1 = vector.extract_strided_slice %0 {offsets = [0, 1, 0], sizes = [8, 15, 16], strides = [1, 1, 1]} : vector<8x16x16xf32> to vector<8x15x16xf32>
    %2 = vector.extract_strided_slice %0 {offsets = [0, 0, 0], sizes = [8, 15, 16], strides = [1, 1, 1]} : vector<8x16x16xf32> to vector<8x15x16xf32>
    %3 = arith.subf %1, %2 : vector<8x15x16xf32>
    %4 = math.absf %3 : vector<8x15x16xf32>
    %5 = vector.shape_cast %4 : vector<8x15x16xf32> to vector<1x8x15x16xf32>
    %cst = arith.constant dense<0.000000e+00> : vector<1xf32>
    %6 = vector.multi_reduction <add>, %5, %cst [1, 2, 3] : vector<1x8x15x16xf32> to vector<1xf32>
    %7 = vector.shape_cast %6 : vector<1xf32> to vector<1x1x1x1xf32>
    %8 = vector.extract %7[0, 0, 0, 0] : f32 from vector<1x1x1x1xf32>
    %9 = vector.broadcast %8 : f32 to vector<1x8x128xf32>
    %c0_2 = arith.constant 0 : index
    %c0_3 = arith.constant 0 : index
    %c0_4 = arith.constant 0 : index
    %10 = vector.load %arg2[%c0_2, %c0_3, %c0_4] : memref<1x8x128xf32, #tpu.memory_space<vmem>>, vector<1x8x128xf32>
    tpu.vector_store %arg2[%c0_2, %c0_3, %c0_4], %9 {strides = array<i32>} : memref<1x8x128xf32, #tpu.memory_space<vmem>>, vector<1x8x128xf32>,
    %11 = vector.extract_strided_slice %0 {offsets = [0, 0, 1], sizes = [8, 16, 15], strides = [1, 1, 1]} : vector<8x16x16xf32> to vector<8x16x15xf32>
    %12 = vector.extract_strided_slice %0 {offsets = [0, 0, 0], sizes = [8, 16, 15], strides = [1, 1, 1]} : vector<8x16x16xf32> to vector<8x16x15xf32>
    %13 = arith.subf %11, %12 : vector<8x16x15xf32>
    %14 = math.absf %13 : vector<8x16x15xf32>
    %15 = vector.shape_cast %14 : vector<8x16x15xf32> to vector<1x8x16x15xf32>
    %cst_5 = arith.constant dense<0.000000e+00> : vector<1xf32>
    %16 = vector.multi_reduction <add>, %15, %cst_5 [1, 2, 3] : vector<1x8x16x15xf32> to vector<1xf32>
    %17 = vector.shape_cast %16 : vector<1xf32> to vector<1x1x1x1xf32>
    %18 = vector.extract %17[0, 0, 0, 0] : f32 from vector<1x1x1x1xf32>
    %19 = vector.broadcast %18 : f32 to vector<1x8x128xf32>
    %c0_6 = arith.constant 0 : index
    %c0_7 = arith.constant 0 : index
    %c0_8 = arith.constant 0 : index
    %20 = vector.load %arg3[%c0_6, %c0_7, %c0_8] : memref<1x8x128xf32, #tpu.memory_space<vmem>>, vector<1x8x128xf32>
    tpu.vector_store %arg3[%c0_6, %c0_7, %c0_8], %19 {strides = array<i32>} : memref<1x8x128xf32, #tpu.memory_space<vmem>>, vector<1x8x128xf32>,
    return
  }
  func.func @transform_0(%arg0: i32) -> (i32, i32, i32) {
    %c0_i32 = arith.constant 0 : i32
    %c0_i32_0 = arith.constant 0 : i32
    %c0_i32_1 = arith.constant 0 : i32
    return %arg0, %c0_i32, %c0_i32_0 : i32, i32, i32
  }
  func.func @transform_1(%arg0: i32) -> (i32, i32, i32) {
    %c0_i32 = arith.constant 0 : i32
    %c0_i32_0 = arith.constant 0 : i32
    %c0_i32_1 = arith.constant 0 : i32
    return %arg0, %c0_i32, %c0_i32_0 : i32, i32, i32
  }
  func.func @transform_2(%arg0: i32) -> (i32, i32, i32) {
    %c0_i32 = arith.constant 0 : i32
    %c0_i32_0 = arith.constant 0 : i32
    %c0_i32_1 = arith.constant 0 : i32
    return %arg0, %c0_i32, %c0_i32_0 : i32, i32, i32
  }
}

</mosaic_0001>

<bundles_post_ra>
// kernel: tpu_custom_call.1
= control target key start
LH: loop header
LB: loop body
LE: loop exit
PB: predicated region body
PF: predicated region fallthrough
CT: control target
= control target key end

     0   :  { %8 = vsyncpa [#allocation3], 0  ;;  %s734_s0 = inlined_call_operand.hbm [shape: f32[8,16,16], index: 0, kind: input, shape index: {}]   ;;  %s735_s1 = inlined_call_operand.hbm [shape: f32[1,8,128], index: 1, kind: output, shape index: {0}]   ;;  %s736_s2 = inlined_call_operand.hbm [shape: f32[1,8,128], index: 2, kind: output, shape index: {1}]  }
   0x1   :  { %9 = vsyncpa [#allocation4], 0 }
   0x2   :  { %10 = vsyncpa [#allocation7], 0  ;;  %s15_s11 = sshll.u32 %s734_s0, 4  ;;  %s543_s12 = smov [#allocation2]   ;;  %s16_s11 = int_to_ptr.hbm [resolvable:$true] %s15_s11 }
   0x3   :  { %s17_s13 = sshll.u32 %s543_s12, 4  ;;  %s544_s14 = smov 128   ;;  %s18_s13 = int_to_ptr.vmem [resolvable:$true] %s17_s13 }
   0x4   :  { %s545_s15 = smov 8  }
   0x5   :  { %23 = dma.hbm_to_vmem [thread:$0]  %s16_s11, 2048, %s18_s13, [#allocation3], %s544_s14, %s544_s14, %s545_s15  }
   0x6   :  { %537 = dma.done.wait [#allocation3], 2048  }
   0x7   :  { %538 = vsyncadd [#allocation3], 4294965248  ;;  %v568_v0 = vld [vmem:[#allocation2 + $0x10] sm:$0xff]  ;;  %v570_v1 = vld [vmem:[#allocation2] sm:$0xff]  ;;  %s546_s16 = smov 1   ;;  %s547_s0 = smov 127  }
   0x8   :  { %238 = vrot.lane.b32.xlu1 %v568_v0, %s546_s16  ;;  %234 = vrot.lane.b32.xlu0 %v570_v1, %s546_s16  ;;  %v574_v2 = vld [vmem:[#allocation2 + $0x20] sm:$0xff]  ;;  %v577_v3 = vld [vmem:[#allocation2 + $0x18] sm:$0xff]  ;;  %v579_v4 = vld [vmem:[#allocation2 + $0x8] sm:$0xff]  ;;  %vm60_vm0 = vcmask 1040384   ;;  %vm149_vm1 = vcmask 1046528   ;;  %vm190_vm2 = vcmask 130048  }
   0x9   :  { %242 = vrot.lane.b32.xlu2 %v574_v2, %s546_s16  ;;  %v581_v5 = vld [vmem:[#allocation2 + $0x28] sm:$0xff]  ;;  %v586_v6 = vld [vmem:[#allocation2 + $0x30] sm:$0xff]  ;;  %v588_v7 = vld [vmem:[#allocation2 + $0x38] sm:$0xff]  ;;  %vm192_vm3 = vcmask 129024   ;;  %vm378_vm4 = vcmask 121856   ;;  %s548_s17 = smov [#allocation5]  }
   0xa   :  { %v590_v8 = vld [vmem:[#allocation2 + $0x40] sm:$0xff]  ;;  %v595_v9 = vld [vmem:[#allocation2 + $0x48] sm:$0xff]  ;;  %v597_v10 = vld [vmem:[#allocation2 + $0x50] sm:$0xff]  ;;  %s426_s18 = sshll.u32 %s548_s17, 4  ;;  %s428_s21 = sshll.u32 %s735_s1, 4  ;;  %s427_s18 = int_to_ptr.vmem [resolvable:$true] %s426_s18  ;;  %s429_s21 = int_to_ptr.hbm [resolvable:$true] %s428_s21 }
   0xb   :  { %v599_v11 = vld [vmem:[#allocation2 + $0x58] sm:$0xff]  ;;  %v604_v12 = vld [vmem:[#allocation2 + $0x60] sm:$0xff]  ;;  %v606_v13 = vld [vmem:[#allocation2 + $0x68] sm:$0xff]  ;;  %s549_s23 = smov [#allocation6]   ;;  %s439_s27 = sshll.u32 %s736_s2, 4  ;;  %s440_s27 = int_to_ptr.hbm [resolvable:$true] %s439_s27 }
   0xc   :  { %v608_v14 = vld [vmem:[#allocation2 + $0x70] sm:$0xff]  ;;  %v613_v15 = vld [vmem:[#allocation2 + $0x78] sm:$0xff]  ;;  %s437_s24 = sshll.u32 %s549_s23, 4  ;;  %s438_s24 = int_to_ptr.vmem [resolvable:$true] %s437_s24 }
  0x10   :  { %240 = vrot.lane.b32.xlu1 %v577_v3, %s546_s16  ;;  %236 = vrot.lane.b32.xlu0 %v579_v4, %s546_s16 }
  0x11   :  { %244 = vrot.lane.b32.xlu2 %v581_v5, %s546_s16 }
  0x18   :  { %246 = vrot.lane.b32.xlu0 %v586_v6, %s546_s16  ;;  %248 = vrot.lane.b32.xlu1 %v588_v7, %s546_s16 }
  0x19   :  { %250 = vrot.lane.b32.xlu2 %v590_v8, %s546_s16 }
  0x20   :  { %252 = vrot.lane.b32.xlu0 %v595_v9, %s546_s16  ;;  %254 = vrot.lane.b32.xlu1 %v597_v10, %s546_s16 }
  0x21   :  { %256 = vrot.lane.b32.xlu2 %v599_v11, %s546_s16 }
  0x28   :  { %258 = vrot.lane.b32.xlu0 %v604_v12, %s546_s16  ;;  %260 = vrot.lane.b32.xlu1 %v606_v13, %s546_s16 }
  0x29   :  { %262 = vrot.lane.b32.xlu2 %v608_v14, %s546_s16 }
  0x30   :  { %264 = vrot.lane.b32.xlu0 %v613_v15, %s546_s16 }
  0x63   :  { %v243_v16 = vpop.permute.xlu2 %242 }
  0x64   :  { %v286_v34 = vsub.f32 %v574_v2, %v243_v16  ;;  %v61_v16 = vrot.slane %v570_v1, 7 }
  0x66   :  { %v302_v40 = vand.u32 2147483647, %v286_v34 }
  0x6b   :  { %v245_v17 = vpop.permute.xlu2 %244 }
  0x6c   :  { %v287_v24 = vsub.f32 %v581_v5, %v245_v17  ;;  %v62_v17 = vrot.slane %v579_v4, 7 }
  0x6e   :  { %v303_v30 = vand.u32 2147483647, %v287_v24 }
  0x73   :  { %v251_v25 = vpop.permute.xlu2 %250 }
  0x74   :  { %v290_v33 = vsub.f32 %v590_v8, %v251_v25 }
  0x76   :  { %v306_v39 = vand.u32 2147483647, %v290_v33 }
  0x7a   :  { %v239_v18 = vpop.permute.xlu1 %238  ;;  %v235_v19 = vpop.permute.xlu0 %234 }
  0x7b   :  { %v284_v20 = vsub.f32 %v568_v0, %v239_v18  ;;  %v282_v21 = vsub.f32 %v570_v1, %v235_v19  ;;  %v257_v38 = vpop.permute.xlu2 %256  ;;  %v64_v18 = vrot.slane %v568_v0, 7  ;;  %v65_v19 = vrot.slane %v577_v3, 7 }
  0x7c   :  { %v293_v43 = vsub.f32 %v599_v11, %v257_v38 }
  0x7d   :  { %v300_v22 = vand.u32 2147483647, %v284_v20  ;;  %v298_v23 = vand.u32 2147483647, %v282_v21  ;;  %v63_v20 = vsel %vm60_vm0, %v61_v16, %v62_v17  ;;  %v101_v21 = vsub.f32 %v570_v1, %v61_v16 }
  0x7e   :  { %v309_v48 = vand.u32 2147483647, %v293_v43  ;;  %v103_v24 = vsub.f32 %v568_v0, %v64_v18 }
  0x7f   :  { %334 = vrot.lane.b32.xlu0 %v300_v22, %s547_s0  ;;  %330 = vrot.lane.b32.xlu1 %v298_v23, %s547_s0  ;;  %v102_v22 = vsub.f32 %v579_v4, %v63_v20  ;;  %v66_v23 = vsel %vm60_vm0, %v64_v18, %v65_v19  ;;  %v117_v25 = vand.u32 2147483647, %v101_v21 }
  0x82   :  { %v241_v26 = vpop.permute.xlu1 %240  ;;  %v237_v27 = vpop.permute.xlu0 %236 }
  0x83   :  { %v285_v28 = vsub.f32 %v577_v3, %v241_v26  ;;  %v283_v29 = vsub.f32 %v579_v4, %v237_v27  ;;  %v263_v50 = vpop.permute.xlu2 %262  ;;  %v104_v26 = vsub.f32 %v577_v3, %v66_v23  ;;  %v118_v27 = vand.u32 2147483647, %v102_v22 }
  0x84   :  { %v296_v52 = vsub.f32 %v608_v14, %v263_v50 }
  0x85   :  { %v301_v31 = vand.u32 2147483647, %v285_v28  ;;  %v299_v32 = vand.u32 2147483647, %v283_v29  ;;  %v67_v28 = vrot.slane %v574_v2, 7  ;;  %v68_v29 = vrot.slane %v581_v5, 7 }
  0x86   :  { %v312_v56 = vand.u32 2147483647, %v296_v52  ;;  %v151_v33 = vrot.slane %v118_v27, 1 }
  0x87   :  { %336 = vrot.lane.b32.xlu1 %v301_v31, %s547_s0  ;;  %332 = vrot.lane.b32.xlu2 %v299_v32, %s547_s0  ;;  %v150_v31 = vrot.slane %v117_v25, 1  ;;  %v120_v32 = vand.u32 2147483647, %v104_v26  ;;  %v69_v1 = vsel %vm60_vm0, %v67_v28, %v68_v29  ;;  %v105_v4 = vsub.f32 %v574_v2, %v67_v28 }
  0x88   :  { %340 = vrot.lane.b32.xlu0 %v303_v30, %s547_s0  ;;  %v119_v30 = vand.u32 2147483647, %v103_v24  ;;  %v79_v24 = vrot.slane %v604_v12, 7  ;;  %v80_v25 = vrot.slane %v606_v13, 7 }
  0x89   :  { %v154_v34 = vrot.slane %v120_v32, 1  ;;  %v152_v3 = vsel %vm149_vm1, %v150_v31, %v151_v33 }
  0x8a   :  { %v247_v35 = vpop.permute.xlu0 %246  ;;  %v249_v36 = vpop.permute.xlu1 %248  ;;  %v153_v0 = vrot.slane %v119_v30, 1  ;;  %v191_v38 = vsel %vm190_vm2, %v152_v3, 0.0  ;;  %v81_v31 = vsel %vm60_vm0, %v79_v24, %v80_v25  ;;  %v113_v32 = vsub.f32 %v604_v12, %v79_v24 }
  0x8b   :  { %v288_v37 = vsub.f32 %v586_v6, %v247_v35  ;;  %v289_v42 = vsub.f32 %v588_v7, %v249_v36  ;;  %v106_v35 = vsub.f32 %v581_v5, %v69_v1  ;;  %v70_v36 = vrot.slane %v586_v6, 7 }
  0x8d   :  { %v304_v41 = vand.u32 2147483647, %v288_v37  ;;  %v305_v47 = vand.u32 2147483647, %v289_v42  ;;  %v71_v37 = vrot.slane %v588_v7, 7 }
  0x8e   :  { %v122_v42 = vand.u32 2147483647, %v106_v35 }
  0x8f   :  { %338 = vrot.lane.b32.xlu2 %v302_v40, %s547_s0  ;;  %342 = vrot.lane.b32.xlu1 %v304_v41, %s547_s0  ;;  %v155_v40 = vsel %vm149_vm1, %v153_v0, %v154_v34  ;;  %v121_v41 = vand.u32 2147483647, %v105_v4  ;;  %v72_v2 = vsel %vm60_vm0, %v70_v36, %v71_v37  ;;  %v114_v0 = vsub.f32 %v606_v13, %v81_v31 }
  0x90   :  { %346 = vrot.lane.b32.xlu0 %v306_v39, %s547_s0  ;;  %v193_v39 = vsel %vm192_vm3, %v151_v33, 0.0 }
  0x91   :  { %v194_v43 = vadd.f32 %v193_v39, %v191_v38  ;;  %v156_v5 = vrot.slane %v121_v41, 1  ;;  %v130_v38 = vand.u32 2147483647, %v114_v0 }
  0x92   :  { %v253_v44 = vpop.permute.xlu0 %252  ;;  %v255_v45 = vpop.permute.xlu1 %254 }
  0x93   :  { %v291_v46 = vsub.f32 %v595_v9, %v253_v44  ;;  %v292_v51 = vsub.f32 %v597_v10, %v255_v45  ;;  %v195_v44 = vsel %vm190_vm2, %v155_v40, 0.0  ;;  %v107_v45 = vsub.f32 %v586_v6, %v70_v36 }
  0x94   :  { %v196_v50 = vadd.f32 %v195_v44, %v194_v43  ;;  %v83_v36 = vrot.slane %v613_v15, 7  ;;  %v169_v44 = vrot.slane %v130_v38, 1 }
  0x95   :  { %v307_v49 = vand.u32 2147483647, %v291_v46  ;;  %v308_v55 = vand.u32 2147483647, %v292_v51  ;;  %v157_v46 = vrot.slane %v122_v42, 1  ;;  %v197_v51 = vsel %vm192_vm3, %v154_v34, 0.0 }
  0x96   :  { %v123_v52 = vand.u32 2147483647, %v107_v45  ;;  %v129_v34 = vand.u32 2147483647, %v113_v32 }
  0x97   :  { %348 = vrot.lane.b32.xlu1 %v307_v49, %s547_s0  ;;  %344 = vrot.lane.b32.xlu2 %v305_v47, %s547_s0  ;;  %v108_v47 = vsub.f32 %v588_v7, %v72_v2  ;;  %v73_v49 = vrot.slane %v590_v8, 7 }
  0x98   :  { %352 = vrot.lane.b32.xlu0 %v309_v48, %s547_s0  ;;  %v74_v48 = vrot.slane %v595_v9, 7  ;;  %v168_v39 = vrot.slane %v129_v34, 1 }
  0x99   :  { %v109_v7 = vsub.f32 %v590_v8, %v73_v49 }
  0x9a   :  { %v259_v53 = vpop.permute.xlu0 %258  ;;  %v261_v57 = vpop.permute.xlu1 %260 }
  0x9b   :  { %v294_v54 = vsub.f32 %v604_v12, %v259_v53  ;;  %v295_v59 = vsub.f32 %v606_v13, %v261_v57  ;;  %v158_v53 = vsel %vm149_vm1, %v156_v5, %v157_v46  ;;  %v159_v57 = vrot.slane %v123_v52, 1 }
  0x9c   :  { %v199_v6 = vsel %vm190_vm2, %v158_v53, 0.0  ;;  %v125_v17 = vand.u32 2147483647, %v109_v7  ;;  %v217_v52 = vsel %vm192_vm3, %v169_v44, 0.0 }
  0x9d   :  { %v310_v58 = vand.u32 2147483647, %v294_v54  ;;  %v311_v62 = vand.u32 2147483647, %v295_v59  ;;  %v124_v54 = vand.u32 2147483647, %v108_v47  ;;  %v170_v47 = vsel %vm149_vm1, %v168_v39, %v169_v44 }
  0x9e   :  { %v162_v22 = vrot.slane %v125_v17, 1 }
  0x9f   :  { %354 = vrot.lane.b32.xlu1 %v310_v58, %s547_s0  ;;  %350 = vrot.lane.b32.xlu2 %v308_v55, %s547_s0  ;;  %v75_v55 = vsel %vm60_vm0, %v73_v49, %v74_v48  ;;  %v160_v58 = vrot.slane %v124_v54, 1  ;;  %v215_v49 = vsel %vm190_vm2, %v170_v47, 0.0 }
  0xa0   :  { %358 = vrot.lane.b32.xlu0 %v312_v56, %s547_s0  ;;  %v198_v56 = vadd.f32 %v197_v51, %v196_v50  ;;  %v110_v59 = vsub.f32 %v595_v9, %v75_v55 }
  0xa1   :  { %v161_v16 = vsel %vm149_vm1, %v159_v57, %v160_v58  ;;  %v205_v27 = vsel %vm192_vm3, %v160_v58, 0.0 }
  0xa2   :  { %v265_v60 = vpop.permute.xlu0 %264  ;;  %v126_v18 = vand.u32 2147483647, %v110_v59  ;;  %v203_v21 = vsel %vm190_vm2, %v161_v16, 0.0 }
  0xa3   :  { %v297_v61 = vsub.f32 %v613_v15, %v265_v60  ;;  %v76_v60 = vrot.slane %v597_v10, 7 }
  0xa4   :  { %v163_v8 = vrot.slane %v126_v18, 1 }
  0xa5   :  { %v313_v63 = vand.u32 2147483647, %v297_v61  ;;  %v77_v61 = vrot.slane %v599_v11, 7  ;;  %v111_v9 = vsub.f32 %v597_v10, %v76_v60  ;;  %v82_v10 = vrot.slane %v608_v14, 7 }
  0xa6   :  { %v164_v28 = vsel %vm149_vm1, %v162_v22, %v163_v8  ;;  %v209_v12 = vsel %vm192_vm3, %v163_v8, 0.0 }
  0xa7   :  { %360 = vrot.lane.b32.xlu1 %v313_v63, %s547_s0  ;;  %356 = vrot.lane.b32.xlu2 %v311_v62, %s547_s0  ;;  %v200_v62 = vadd.f32 %v199_v6, %v198_v56  ;;  %v201_v63 = vsel %vm192_vm3, %v157_v46, 0.0  ;;  %v78_v19 = vsel %vm60_vm0, %v76_v60, %v77_v61  ;;  %v127_v29 = vand.u32 2147483647, %v111_v9 }
  0xa8   :  { %v112_v23 = vsub.f32 %v599_v11, %v78_v19  ;;  %v207_v11 = vsel %vm190_vm2, %v164_v28, 0.0  ;;  %v115_v35 = vsub.f32 %v608_v14, %v82_v10  ;;  %v84_v2 = vsel %vm60_vm0, %v82_v10, %v83_v36 }
  0xa9   :  { %v202_v20 = vadd.f32 %v201_v63, %v200_v62  ;;  %v165_v1 = vrot.slane %v127_v29, 1  ;;  %v116_v13 = vsub.f32 %v613_v15, %v84_v2 }
  0xaa   :  { %v128_v30 = vand.u32 2147483647, %v112_v23  ;;  %v131_v40 = vand.u32 2147483647, %v115_v35 }
  0xab   :  { %v204_v26 = vadd.f32 %v203_v21, %v202_v20  ;;  %v132_v46 = vand.u32 2147483647, %v116_v13 }
  0xac   :  { %v166_v4 = vrot.slane %v128_v30, 1  ;;  %v171_v5 = vrot.slane %v131_v40, 1 }
  0xad   :  { %v206_v33 = vadd.f32 %v205_v27, %v204_v26  ;;  %v172_v50 = vrot.slane %v132_v46, 1 }
  0xae   :  { %v167_v37 = vsel %vm149_vm1, %v165_v1, %v166_v4  ;;  %v213_v14 = vsel %vm192_vm3, %v166_v4, 0.0 }
  0xaf   :  { %v208_v3 = vadd.f32 %v207_v11, %v206_v33  ;;  %v211_v43 = vsel %vm190_vm2, %v167_v37, 0.0  ;;  %v173_v54 = vsel %vm149_vm1, %v171_v5, %v172_v50  ;;  %v221_v59 = vsel %vm192_vm3, %v172_v50, 0.0 }
  0xb0   :  { %v219_v6 = vsel %vm190_vm2, %v173_v54, 0.0 }
  0xb1   :  { %v210_v42 = vadd.f32 %v209_v12, %v208_v3 }
  0xb3   :  { %v212_v45 = vadd.f32 %v211_v43, %v210_v42 }
  0xb5   :  { %v214_v48 = vadd.f32 %v213_v14, %v212_v45 }
  0xb7   :  { %v216_v51 = vadd.f32 %v215_v49, %v214_v48 }
  0xb9   :  { %v218_v15 = vadd.f32 %v217_v52, %v216_v51 }
  0xbb   :  { %v220_v58 = vadd.f32 %v219_v6, %v218_v15 }
  0xbd   :  { %v222_v61 = vadd.f32 %v221_v59, %v220_v58 }
  0xd0   :  { %223 = vadd.xlane.f32.xlu2 %v222_v61 }
  0xe1   :  { %v333_v41 = vpop.permute.xlu2 %332 }
  0xe2   :  { %v380_v7 = vsel %vm378_vm4, %v333_v41, 0.0 }
  0xe9   :  { %v339_v57 = vpop.permute.xlu2 %338 }
  0xea   :  { %v386_v21 = vsel %vm378_vm4, %v339_v57, 0.0 }
  0xf1   :  { %v331_v53 = vpop.permute.xlu1 %330  ;;  %v335_v56 = vpop.permute.xlu0 %334 }
  0xf2   :  { %v379_v55 = vsel %vm378_vm4, %v331_v53, 0.0  ;;  %v382_v62 = vsel %vm378_vm4, %v335_v56, 0.0  ;;  %v345_v20 = vpop.permute.xlu2 %344 }
  0xf3   :  { %v381_v60 = vadd.f32 %v380_v7, %v379_v55  ;;  %v392_v25 = vsel %vm378_vm4, %v345_v20, 0.0 }
  0xf5   :  { %v383_v63 = vadd.f32 %v382_v62, %v381_v60 }
  0xf9   :  { %v337_v16 = vpop.permute.xlu1 %336 }
  0xfa   :  { %v384_v17 = vsel %vm378_vm4, %v337_v16, 0.0  ;;  %v341_v18 = vpop.permute.xlu0 %340  ;;  %v351_v29 = vpop.permute.xlu2 %350 }
  0xfb   :  { %v385_v19 = vadd.f32 %v384_v17, %v383_v63  ;;  %v388_v8 = vsel %vm378_vm4, %v341_v18, 0.0  ;;  %v398_v10 = vsel %vm378_vm4, %v351_v29, 0.0 }
  0xfd   :  { %v387_v22 = vadd.f32 %v386_v21, %v385_v19 }
  0xff   :  { %v389_v9 = vadd.f32 %v388_v8, %v387_v22 }
 0x101   :  { %v343_v23 = vpop.permute.xlu1 %342 }
 0x102   :  { %v390_v24 = vsel %vm378_vm4, %v343_v23, 0.0  ;;  %v347_v26 = vpop.permute.xlu0 %346  ;;  %v357_v34 = vpop.permute.xlu2 %356 }
 0x103   :  { %v391_v27 = vadd.f32 %v390_v24, %v389_v9  ;;  %v394_v30 = vsel %vm378_vm4, %v347_v26, 0.0  ;;  %v404_v37 = vsel %vm378_vm4, %v357_v34, 0.0 }
 0x105   :  { %v393_v28 = vadd.f32 %v392_v25, %v391_v27 }
 0x107   :  { %v395_v31 = vadd.f32 %v394_v30, %v393_v28 }
 0x109   :  { %v349_v32 = vpop.permute.xlu1 %348 }
 0x10a   :  { %v396_v33 = vsel %vm378_vm4, %v349_v32, 0.0  ;;  %v353_v11 = vpop.permute.xlu0 %352 }
 0x10b   :  { %v397_v1 = vadd.f32 %v396_v33, %v395_v31  ;;  %v400_v0 = vsel %vm378_vm4, %v353_v11, 0.0 }
 0x10d   :  { %v399_v4 = vadd.f32 %v398_v10, %v397_v1 }
 0x10f   :  { %v401_v3 = vadd.f32 %v400_v0, %v399_v4 }
 0x111   :  { %v355_v35 = vpop.permute.xlu1 %354 }
 0x112   :  { %v402_v36 = vsel %vm378_vm4, %v355_v35, 0.0  ;;  %v359_v12 = vpop.permute.xlu0 %358 }
 0x113   :  { %v403_v38 = vadd.f32 %v402_v36, %v401_v3  ;;  %v406_v40 = vsel %vm378_vm4, %v359_v12, 0.0 }
 0x115   :  { %v405_v39 = vadd.f32 %v404_v37, %v403_v38 }
 0x117   :  { %v407_v41 = vadd.f32 %v406_v40, %v405_v39 }
 0x119   :  { %v361_v42 = vpop.permute.xlu1 %360 }
 0x11a   :  { %v408_v2 = vsel %vm378_vm4, %v361_v42, 0.0 }
 0x11b   :  { %v409_v43 = vadd.f32 %v408_v2, %v407_v41 }
 0x11d   :  { %410 = vadd.xlane.f32.xlu0 %v409_v43 }
 0x143   :  { %v224_v13 = vpop.xlane.xlu2 %223 }
 0x144   :  { %v225_v44 = vrot.slane %v224_v13, 4 }
 0x146   :  { %v226_v45 = vadd.f32 %v225_v44, %v224_v13 }
 0x148   :  { %v227_v14 = vrot.slane %v226_v45, 2 }
 0x14a   :  { %v228_v5 = vadd.f32 %v227_v14, %v226_v45 }
 0x14c   :  { %v229_v46 = vrot.slane %v228_v5, 1 }
 0x14e   :  { %v230_v47 = vadd.f32 %v229_v46, %v228_v5 }
 0x150   :  { %454 = vpush %v230_v47 }
 0x181   :  { %s455_s22 = spop %454 }
 0x182   :  { %v232_v15 = vstv %s455_s22 }
 0x183   :  { %233 = vst [vmem:[#allocation5] sm:$0xff] %v232_v15 }
 0x184   :  { %431 = dma.vmem_to_hbm [thread:$0]  %s427_s18, 128, %s429_s21, [#allocation4]  }
 0x190   :  { %v411_v48 = vpop.xlane.xlu0 %410 }
 0x191   :  { %v412_v49 = vrot.slane %v411_v48, 4 }
 0x193   :  { %v413_v50 = vadd.f32 %v412_v49, %v411_v48 }
 0x195   :  { %v414_v51 = vrot.slane %v413_v50, 2 }
 0x197   :  { %v415_v52 = vadd.f32 %v414_v51, %v413_v50 }
 0x199   :  { %v416_v53 = vrot.slane %v415_v52, 1 }
 0x19b   :  { %v417_v54 = vadd.f32 %v416_v53, %v415_v52 }
 0x19d   :  { %456 = vpush %v417_v54 }
 0x1ce   :  { %s457_s28 = spop %456 }
 0x1cf   :  { %v419_v55 = vstv %s457_s28 }
 0x1d0   :  { %420 = vst [vmem:[#allocation6] sm:$0xff] %v419_v55 }
 0x1d1   :  { %442 = dma.vmem_to_hbm [thread:$0]  %s438_s24, 128, %s440_s27, [#allocation7]  }
 0x1d2   :  { %539 = dma.done.wait [#allocation4], 128  }
 0x1d3   :  { %540 = vsyncadd [#allocation4], 4294967168 }
 0x1d4   :  { %541 = dma.done.wait [#allocation7], 128  }
 0x1d5   :  { %542 = vsyncadd [#allocation7], 4294967168 }
 0x1d6   :  { %451 = vsyncpa [#allocation3], 1 }
 0x1d7   :  { %452 = vsyncpa [#allocation4], 1 }
 0x1d8   :  { %453 = vsyncpa [#allocation7], 1 }

</bundles_post_ra>
